<compile_context>
chip_gen: v7x
topology: tpu7x:2x2x1
jax: 0.10.0
libtpu: 0.0.40
codegen_flags: <defaults>
</compile_context>

<pallas_src>
import jax
import jax.numpy as jnp
from jax import lax
from jax.experimental import pallas as pl
from jax.experimental.pallas import tpu as pltpu


_NUM_CORES = 2     # leading "parallel" grid axis (uses v7x's 2nd TensorCore)
_LANES = 512       # slab width: multiple of 128 -> lane-dense, contiguous DMA
_SUB = 8           # f32 sublane tile


def _cdiv(a, b):
    return (a + b - 1) // b


def _round_up(x, m):
    return ((x + m - 1) // m) * m


def _vmem_info():
    """(physical VMEM bytes, per-buffer tile budget bytes), generation-aware."""
    try:
        vmem_phys = int(pltpu.get_tpu_info().vmem_capacity_bytes)
    except Exception:
        vmem_phys = 64 * 1024 * 1024          # conservative (v7x-sized) fallback
    # 2 inputs x 2 pipeline buffers -> keep total around <= half of physical VMEM.
    budget = int(min(16 * 1024 * 1024, max(4 * 1024 * 1024, vmem_phys // 8)))
    return vmem_phys, budget


def _combined_loss_kernel(x_ref, labels_ref, w_ref, recon_ref, orig_ref,
                          ce_out_ref, ssq_out_ref, acc_ref):
    k = pl.program_id(1)
    last = pl.num_programs(1) - 1

    @pl.when(k == 0)
    def _init():
        acc_ref[...] = jnp.zeros_like(acc_ref)

    # ---- every step: pure vld + VPU work (hidden under the chunk DMA) ----
    # recon/orig blocks are (K8, 8, W); summing over axis 0 is vreg-row adds
    # only (no cross-lane/sublane movement), accumulated into an (8, W) buffer.
    d = recon_ref[...].astype(jnp.float32) - orig_ref[...].astype(jnp.float32)
    acc_ref[...] += jnp.sum(d * d, axis=0)

    # ---- last step (per core): tiny weighted CE + write per-core partials ----
    @pl.when(k == last)
    def _finalize():
        x = x_ref[...].astype(jnp.float32)            # [B, C]
        B, C = x.shape
        labels = labels_ref[...]                      # [B, 1] int32
        class_w = w_ref[...].astype(jnp.float32)      # [1, C]

        iota = lax.broadcasted_iota(jnp.int32, (B, C), 1)
        onehot = iota == labels                       # [B, C]

        m = jnp.max(x, axis=-1, keepdims=True)                              # [B,1]
        lse = m + jnp.log(jnp.sum(jnp.exp(x - m), axis=-1, keepdims=True))  # [B,1]
        logit_y = jnp.sum(jnp.where(onehot, x, 0.0), axis=-1, keepdims=True)
        w_y = jnp.sum(jnp.where(onehot, class_w, 0.0), axis=-1, keepdims=True)
        loss_cls = jnp.sum(w_y * (lse - logit_y)) / jnp.sum(w_y)

        ce_out_ref[...] = jnp.full(ce_out_ref.shape, loss_cls, jnp.float32)
        ssq_out_ref[0] = acc_ref[...]


def combined_loss_weighted(class_output, labels, recon_waveform, original_waveform,
                           class_weights, classification_weight=1.0,
                           reconstruction_weight=1.0, tile_budget_bytes=None):
    """Pallas implementation of CombinedLossWeighted.forward.

    Returns (loss, loss_cls, loss_recon) as float32 scalars.
    """
    B, C = class_output.shape
    labels_2d = labels.astype(jnp.int32).reshape(B, 1)
    class_w_2d = class_weights.astype(jnp.float32).reshape(1, C)

    # Flatten waveforms (MSE is a mean over all elements).  Native dtype kept.
    recon_flat = recon_waveform.reshape(-1)
    orig_flat = original_waveform.reshape(-1)
    total = recon_flat.shape[0]
    assert orig_flat.shape[0] == total, "waveform shapes must match"
    wave_itemsize = jnp.dtype(recon_flat.dtype).itemsize
    cls_itemsize = jnp.dtype(class_output.dtype).itemsize

    vmem_phys, default_budget = _vmem_info()
    budget = int(tile_budget_bytes) if tile_budget_bytes is not None else default_budget

    # ---- contiguous (rows, 8, W) slab layout, chunked along the row axis ----
    W = _LANES
    rows_needed = _cdiv(total, W)
    rows_budget = max(_SUB, (budget // (W * wave_itemsize)) // _SUB * _SUB)
    rows_per_core = _cdiv(rows_needed, _NUM_CORES)
    rows_per_tile = min(rows_budget, _round_up(rows_per_core, _SUB))
    chunks_per_core = _cdiv(rows_per_core, rows_per_tile)
    rows_padded = _NUM_CORES * chunks_per_core * rows_per_tile
    padded_total = rows_padded * W
    k8 = rows_per_tile // _SUB

    def _to_slab(flat):
        if padded_total != total:
            # Zero padding contributes 0 to the sum of squares (diff == 0).
            flat = jnp.pad(flat, (0, padded_total - total))
        return flat.reshape(rows_padded // _SUB, _SUB, W)

    recon_slab = _to_slab(recon_flat)
    orig_slab = _to_slab(orig_flat)

    wave_spec = pl.BlockSpec(
        (k8, _SUB, W),
        lambda c, k: (c * chunks_per_core + k, 0, 0),
        pipeline_mode=pl.Buffered(2))

    # ---- VMEM budget / cost hint ----
    tile_bytes = rows_per_tile * W * wave_itemsize
    vmem_need = (2 * 2 * tile_bytes                               # 2 inputs x 2 bufs
                 + _SUB * W * 4                                   # accumulator
                 + 2 * (B * C * cls_itemsize + B * 4 + C * 4)     # CE blocks
                 + 2 * (_SUB * 128 * 4 + _SUB * W * 4))           # outputs
    vmem_limit = int(min(max((vmem_phys * 3) // 4, 16 << 20),
                         max(vmem_need + (4 << 20), 16 << 20)))

    cost = pl.CostEstimate(
        flops=3 * padded_total + 2 * 12 * B * C,
        transcendentals=2 * B * (C + 1),
        bytes_accessed=2 * padded_total * wave_itemsize + B * C * cls_itemsize
                       + B * 4 + C * 4 + 2 * _SUB * (W + 128) * 4,
    )

    ce_out, ssq_out = pl.pallas_call(
        _combined_loss_kernel,
        out_shape=(
            jax.ShapeDtypeStruct((_NUM_CORES, _SUB, 128), jnp.float32),  # CE (bcast)
            jax.ShapeDtypeStruct((_NUM_CORES, _SUB, W), jnp.float32),    # partial sq
        ),
        grid_spec=pltpu.PrefetchScalarGridSpec(
            num_scalar_prefetch=0,
            grid=(_NUM_CORES, chunks_per_core),
            in_specs=[
                pl.BlockSpec((B, C), lambda c, k: (0, 0)),   # class_output (once)
                pl.BlockSpec((B, 1), lambda c, k: (0, 0)),   # labels       (once)
                pl.BlockSpec((1, C), lambda c, k: (0, 0)),   # class_weights(once)
                wave_spec,                                   # recon slab, chunked
                wave_spec,                                   # orig  slab, chunked
            ],
            out_specs=[
                pl.BlockSpec((1, _SUB, 128), lambda c, k: (c, 0, 0)),
                pl.BlockSpec((1, _SUB, W), lambda c, k: (c, 0, 0)),
            ],
            scratch_shapes=[pltpu.VMEM((_SUB, W), jnp.float32)],
        ),
        compiler_params=pltpu.CompilerParams(
            dimension_semantics=("parallel", "arbitrary"),
            vmem_limit_bytes=vmem_limit,
        ),
        cost_estimate=cost,
    )(class_output, labels_2d, class_w_2d, recon_slab, orig_slab)

    # Per-core partial combine (tiny scalar work, as recommended for the
    # 2-TensorCore split).  Both cores write the same CE value; read core 0's.
    loss_cls = ce_out[0, 0, 0]
    loss_recon = jnp.sum(ssq_out) / jnp.float32(total)
    loss = (jnp.float32(classification_weight) * loss_cls
            + jnp.float32(reconstruction_weight) * loss_recon)
    return loss, loss_cls, loss_recon


def _reference(class_output, labels, recon, orig, class_weights, cw, rw):
    # Pure-JAX reference matching torch semantics (weighted CE mean + MSE mean).
    x = class_output.astype(jnp.float32)
    lse = jax.nn.logsumexp(x, axis=-1)
    logit_y = jnp.take_along_axis(x, labels[:, None], axis=-1)[:, 0]
    w_y = class_weights[labels]
    loss_cls = jnp.sum(w_y * (lse - logit_y)) / jnp.sum(w_y)
    diff = recon.astype(jnp.float32) - orig.astype(jnp.float32)
    loss_recon = jnp.mean(diff * diff)
    return cw * loss_cls + rw * loss_recon, loss_cls, loss_recon


if __name__ == "__main__":
    key = jax.random.PRNGKey(0)
    k1, k2, k3, k4, k5 = jax.random.split(key, 5)

    B, C, L = 8, 4, 2048
    class_output = jax.random.normal(k1, (B, C), dtype=jnp.float32)
    labels = jax.random.randint(k2, (B,), 0, C, dtype=jnp.int32)
    recon = jax.random.normal(k3, (B, 1, L), dtype=jnp.float32)
    orig = jax.random.normal(k4, (B, 1, L), dtype=jnp.float32)
    class_weights = jax.random.uniform(k5, (C,), dtype=jnp.float32,
                                       minval=0.5, maxval=2.0)
    cw, rw = 1.0, 0.5

    ref_loss, ref_cls, ref_rec = _reference(class_output, labels, recon, orig,
                                            class_weights, cw, rw)

    # 1) Default generation-aware tiling (one slab per core, 2-way parallel grid).
    loss, lcls, lrec = combined_loss_weighted(class_output, labels, recon, orig,
                                              class_weights, cw, rw)
    jax.block_until_ready((loss, lcls, lrec))
    assert jnp.allclose(loss, ref_loss, atol=1e-5), (loss, ref_loss)
    assert jnp.allclose(lcls, ref_cls, atol=1e-5), (lcls, ref_cls)
    assert jnp.allclose(lrec, ref_rec, atol=1e-5), (lrec, ref_rec)

    # 2) Tiny tile budget -> multiple pipelined chunks per core (grid (2, >1)).
    loss2, _, _ = combined_loss_weighted(class_output, labels, recon, orig,
                                         class_weights, cw, rw,
                                         tile_budget_bytes=16 * 1024)
    jax.block_until_ready(loss2)
    assert jnp.allclose(loss2, ref_loss, atol=1e-5), (loss2, ref_loss)

    # 3) Awkward length (zero-padded slab path) + native bf16 waveforms.
    L2 = 1000
    recon_bf = jax.random.normal(k3, (B, 1, L2), dtype=jnp.float32).astype(jnp.bfloat16)
    orig_bf = jax.random.normal(k4, (B, 1, L2), dtype=jnp.float32).astype(jnp.bfloat16)
    ref_bf, _, _ = _reference(class_output, labels, recon_bf, orig_bf,
                              class_weights, cw, rw)
    loss_bf, _, _ = combined_loss_weighted(class_output, labels, recon_bf, orig_bf,
                                           class_weights, cw, rw)
    jax.block_until_ready(loss_bf)
    assert jnp.allclose(loss_bf, ref_bf, atol=1e-3), (loss_bf, ref_bf)

    print("KERNEL_OK")
</pallas_src>

<mosaic_0001>
module attributes {stable_mosaic.version = 11 : i64} {
  func.func @_combined_loss_kernel(%arg0: i32, %arg1: i32, %arg2: memref<8x4xf32, #tpu.memory_space<vmem>>, %arg3: memref<8x1xi32, #tpu.memory_space<vmem>>, %arg4: memref<1x4xf32, #tpu.memory_space<vmem>>, %arg5: memref<2x8x512xf32, #tpu.memory_space<vmem>>, %arg6: memref<2x8x512xf32, #tpu.memory_space<vmem>>, %arg7: memref<1x8x128xf32, #tpu.memory_space<vmem>>, %arg8: memref<1x8x512xf32, #tpu.memory_space<vmem>>, %arg9: memref<8x512xf32, #tpu.memory_space<vmem>>) attributes {dimension_semantics = [#tpu.dimension_semantics<parallel>, #tpu.dimension_semantics<arbitrary>], iteration_bounds = array<i64: 2, 1>, scalar_prefetch = 0 : i64, scratch_operands = 1 : i64, tpu.core_type = #tpu.core_type<tc>, window_params = [{pipeline_mode = #tpu.pipeline_mode<synchronous>, transform_indices = @transform_0, window_bounds = array<i64: 8, 4>}, {pipeline_mode = #tpu.pipeline_mode<synchronous>, transform_indices = @transform_1, window_bounds = array<i64: 8, 1>}, {pipeline_mode = #tpu.pipeline_mode<synchronous>, transform_indices = @transform_2, window_bounds = array<i64: 1, 4>}, {pipeline_mode = #tpu.pipeline_mode<double_buffered>, transform_indices = @transform_3, window_bounds = array<i64: 2, 8, 512>}, {pipeline_mode = #tpu.pipeline_mode<double_buffered>, transform_indices = @transform_4, window_bounds = array<i64: 2, 8, 512>}, {transform_indices = @transform_5, window_bounds = array<i64: 1, 8, 128>}, {transform_indices = @transform_6, window_bounds = array<i64: 1, 8, 512>}]} {
    %c0_i32 = arith.constant 0 : i32
    %0 = arith.cmpi eq, %arg1, %c0_i32 : i32
    %1 = arith.extui %0 : i1 to i32
    %c0_i32_0 = arith.constant 0 : i32
    %2 = arith.cmpi ne, %1, %c0_i32_0 : i32
    scf.if %2 {
      %cst_12 = arith.constant 0.000000e+00 : f32
      %14 = vector.broadcast %cst_12 : f32 to vector<8x512xf32>
      %c0_13 = arith.constant 0 : index
      %c0_14 = arith.constant 0 : index
      %15 = vector.load %arg9[%c0_13, %c0_14] : memref<8x512xf32, #tpu.memory_space<vmem>>, vector<8x512xf32>
      tpu.vector_store %arg9[%c0_13, %c0_14], %14 {strides = array<i32>} : memref<8x512xf32, #tpu.memory_space<vmem>>, vector<8x512xf32>,
    } else {
    }
    %c0 = arith.constant 0 : index
    %c0_1 = arith.constant 0 : index
    %c0_2 = arith.constant 0 : index
    %3 = vector.load %arg5[%c0, %c0_1, %c0_2] : memref<2x8x512xf32, #tpu.memory_space<vmem>>, vector<2x8x512xf32>
    %c0_3 = arith.constant 0 : index
    %c0_4 = arith.constant 0 : index
    %c0_5 = arith.constant 0 : index
    %4 = vector.load %arg6[%c0_3, %c0_4, %c0_5] : memref<2x8x512xf32, #tpu.memory_space<vmem>>, vector<2x8x512xf32>
    %5 = arith.subf %3, %4 : vector<2x8x512xf32>
    %c0_6 = arith.constant 0 : index
    %c0_7 = arith.constant 0 : index
    %6 = vector.load %arg9[%c0_6, %c0_7] : memref<8x512xf32, #tpu.memory_space<vmem>>, vector<8x512xf32>
    %7 = arith.mulf %5, %5 : vector<2x8x512xf32>
    %cst = arith.constant dense<0.000000e+00> : vector<8x512xf32>
    %8 = vector.multi_reduction <add>, %7, %cst [0] : vector<2x8x512xf32> to vector<8x512xf32>
    %9 = arith.addf %6, %8 : vector<8x512xf32>
    %c0_8 = arith.constant 0 : index
    %c0_9 = arith.constant 0 : index
    %10 = vector.load %arg9[%c0_8, %c0_9] : memref<8x512xf32, #tpu.memory_space<vmem>>, vector<8x512xf32>
    tpu.vector_store %arg9[%c0_8, %c0_9], %9 {strides = array<i32>} : memref<8x512xf32, #tpu.memory_space<vmem>>, vector<8x512xf32>,
    %c0_i32_10 = arith.constant 0 : i32
    %11 = arith.cmpi eq, %arg1, %c0_i32_10 : i32
    %12 = arith.extui %11 : i1 to i32
    %c0_i32_11 = arith.constant 0 : i32
    %13 = arith.cmpi ne, %12, %c0_i32_11 : i32
    scf.if %13 {
      %c0_12 = arith.constant 0 : index
      %c0_13 = arith.constant 0 : index
      %14 = vector.load %arg2[%c0_12, %c0_13] : memref<8x4xf32, #tpu.memory_space<vmem>>, vector<8x4xf32>
      %c0_14 = arith.constant 0 : index
      %c0_15 = arith.constant 0 : index
      %15 = vector.load %arg3[%c0_14, %c0_15] : memref<8x1xi32, #tpu.memory_space<vmem>>, vector<8x1xi32>
      %c0_16 = arith.constant 0 : index
      %c0_17 = arith.constant 0 : index
      %16 = vector.load %arg4[%c0_16, %c0_17] : memref<1x4xf32, #tpu.memory_space<vmem>>, vector<1x4xf32>
      %17 = tpu.iota {dimensions = array<i32: 1>} : vector<8x4xi32>
      %18 = vector.broadcast %15 : vector<8x1xi32> to vector<8x4xi32>
      %19 = arith.cmpi eq, %17, %18 : vector<8x4xi32>
      %cst_18 = arith.constant dense<0xFF800000> : vector<8xf32>
      %20 = vector.multi_reduction <maximumf>, %14, %cst_18 [1] : vector<8x4xf32> to vector<8xf32>
      %21 = vector.shape_cast %20 : vector<8xf32> to vector<8x1xf32>
      %22 = vector.broadcast %21 : vector<8x1xf32> to vector<8x4xf32>
      %23 = arith.subf %14, %22 : vector<8x4xf32>
      %24 = math.exp %23 : vector<8x4xf32>
      %cst_19 = arith.constant dense<0.000000e+00> : vector<8xf32>
      %25 = vector.multi_reduction <add>, %24, %cst_19 [1] : vector<8x4xf32> to vector<8xf32>
      %26 = vector.shape_cast %25 : vector<8xf32> to vector<8x1xf32>
      %27 = math.log %26 : vector<8x1xf32>
      %28 = arith.addf %21, %27 : vector<8x1xf32>
      %cst_20 = arith.constant 0.000000e+00 : f32
      %29 = vector.broadcast %cst_20 : f32 to vector<8x4xf32>
      %30 = arith.select %19, %14, %29 : vector<8x4xi1>, vector<8x4xf32>
      %cst_21 = arith.constant dense<0.000000e+00> : vector<8xf32>
      %31 = vector.multi_reduction <add>, %30, %cst_21 [1] : vector<8x4xf32> to vector<8xf32>
      %32 = vector.shape_cast %31 : vector<8xf32> to vector<8x1xf32>
      %cst_22 = arith.constant 0.000000e+00 : f32
      %33 = vector.shape_cast %16 : vector<1x4xf32> to vector<1x4xf32>
      %34 = vector.broadcast %33 : vector<1x4xf32> to vector<8x4xf32>
      %35 = vector.broadcast %cst_22 : f32 to vector<8x4xf32>
      %36 = arith.select %19, %34, %35 : vector<8x4xi1>, vector<8x4xf32>
      %cst_23 = arith.constant dense<0.000000e+00> : vector<8xf32>
      %37 = vector.multi_reduction <add>, %36, %cst_23 [1] : vector<8x4xf32> to vector<8xf32>
      %38 = vector.shape_cast %37 : vector<8xf32> to vector<8x1xf32>
      %39 = arith.subf %28, %32 : vector<8x1xf32>
      %40 = arith.mulf %38, %39 : vector<8x1xf32>
      %41 = vector.shape_cast %40 : vector<8x1xf32> to vector<1x8x1xf32>
      %cst_24 = arith.constant dense<0.000000e+00> : vector<1xf32>
      %42 = vector.multi_reduction <add>, %41, %cst_24 [1, 2] : vector<1x8x1xf32> to vector<1xf32>
      %43 = vector.shape_cast %42 : vector<1xf32> to vector<1x1x1xf32>
      %44 = vector.extract %43[0, 0, 0] : f32 from vector<1x1x1xf32>
      %45 = vector.shape_cast %38 : vector<8x1xf32> to vector<1x8x1xf32>
      %cst_25 = arith.constant dense<0.000000e+00> : vector<1xf32>
      %46 = vector.multi_reduction <add>, %45, %cst_25 [1, 2] : vector<1x8x1xf32> to vector<1xf32>
      %47 = vector.shape_cast %46 : vector<1xf32> to vector<1x1x1xf32>
      %48 = vector.extract %47[0, 0, 0] : f32 from vector<1x1x1xf32>
      %49 = arith.divf %44, %48 : f32
      %50 = vector.broadcast %49 : f32 to vector<1x8x128xf32>
      %c0_26 = arith.constant 0 : index
      %c0_27 = arith.constant 0 : index
      %c0_28 = arith.constant 0 : index
      %51 = vector.load %arg7[%c0_26, %c0_27, %c0_28] : memref<1x8x128xf32, #tpu.memory_space<vmem>>, vector<1x8x128xf32>
      tpu.vector_store %arg7[%c0_26, %c0_27, %c0_28], %50 {strides = array<i32>} : memref<1x8x128xf32, #tpu.memory_space<vmem>>, vector<1x8x128xf32>,
      %c0_29 = arith.constant 0 : index
      %c0_30 = arith.constant 0 : index
      %52 = vector.load %arg9[%c0_29, %c0_30] : memref<8x512xf32, #tpu.memory_space<vmem>>, vector<8x512xf32>
      %c0_31 = arith.constant 0 : index
      %c0_32 = arith.constant 0 : index
      %c0_33 = arith.constant 0 : index
      %53 = vector.load %arg8[%c0_31, %c0_32, %c0_33] : memref<1x8x512xf32, #tpu.memory_space<vmem>>, vector<1x8x512xf32>
      %54 = vector.shape_cast %53 : vector<1x8x512xf32> to vector<8x512xf32>
      %55 = vector.shape_cast %52 : vector<8x512xf32> to vector<1x8x512xf32>
      tpu.vector_store %arg8[%c0_31, %c0_32, %c0_33], %55 {strides = array<i32>} : memref<1x8x512xf32, #tpu.memory_space<vmem>>, vector<1x8x512xf32>,
    } else {
    }
    return
  }
  func.func @transform_0(%arg0: i32, %arg1: i32) -> (i32, i32) {
    %c0_i32 = arith.constant 0 : i32
    %c0_i32_0 = arith.constant 0 : i32
    %c0_i32_1 = arith.constant 0 : i32
    return %c0_i32, %c0_i32_0 : i32, i32
  }
  func.func @transform_1(%arg0: i32, %arg1: i32) -> (i32, i32) {
    %c0_i32 = arith.constant 0 : i32
    %c0_i32_0 = arith.constant 0 : i32
    %c0_i32_1 = arith.constant 0 : i32
    return %c0_i32, %c0_i32_0 : i32, i32
  }
  func.func @transform_2(%arg0: i32, %arg1: i32) -> (i32, i32) {
    %c0_i32 = arith.constant 0 : i32
    %c0_i32_0 = arith.constant 0 : i32
    %c0_i32_1 = arith.constant 0 : i32
    return %c0_i32, %c0_i32_0 : i32, i32
  }
  func.func @transform_3(%arg0: i32, %arg1: i32) -> (i32, i32, i32) {
    %c1_i32 = arith.constant 1 : i32
    %0 = arith.muli %arg0, %c1_i32 : i32
    %1 = arith.addi %0, %arg1 : i32
    %c0_i32 = arith.constant 0 : i32
    %c0_i32_0 = arith.constant 0 : i32
    %c0_i32_1 = arith.constant 0 : i32
    return %1, %c0_i32, %c0_i32_0 : i32, i32, i32
  }
  func.func @transform_4(%arg0: i32, %arg1: i32) -> (i32, i32, i32) {
    %c1_i32 = arith.constant 1 : i32
    %0 = arith.muli %arg0, %c1_i32 : i32
    %1 = arith.addi %0, %arg1 : i32
    %c0_i32 = arith.constant 0 : i32
    %c0_i32_0 = arith.constant 0 : i32
    %c0_i32_1 = arith.constant 0 : i32
    return %1, %c0_i32, %c0_i32_0 : i32, i32, i32
  }
  func.func @transform_5(%arg0: i32, %arg1: i32) -> (i32, i32, i32) {
    %c0_i32 = arith.constant 0 : i32
    %c0_i32_0 = arith.constant 0 : i32
    %c0_i32_1 = arith.constant 0 : i32
    return %arg0, %c0_i32, %c0_i32_0 : i32, i32, i32
  }
  func.func @transform_6(%arg0: i32, %arg1: i32) -> (i32, i32, i32) {
    %c0_i32 = arith.constant 0 : i32
    %c0_i32_0 = arith.constant 0 : i32
    %c0_i32_1 = arith.constant 0 : i32
    return %arg0, %c0_i32, %c0_i32_0 : i32, i32, i32
  }
}

</mosaic_0001>

<bundles_post_ra>
// kernel: tpu_custom_call.1
= control target key start
LH: loop header
LB: loop body
LE: loop exit
PB: predicated region body
PF: predicated region fallthrough
CT: control target
= control target key end

     0   :  { %s1284_s0 = inlined_call_operand.vmem [shape: f32[8,4], index: 0, kind: input, shape index: {}]   ;;  %s1285_s1 = inlined_call_operand.vmem [shape: s32[8,1], index: 1, kind: input, shape index: {}]   ;;  %s1286_s2 = inlined_call_operand.vmem [shape: f32[1,4], index: 2, kind: input, shape index: {}]   ;;  %s1287_s3 = inlined_call_operand.hbm [shape: f32[4,8,512], index: 3, kind: input, shape index: {}]   ;;  %s1288_s4 = inlined_call_operand.hbm [shape: f32[4,8,512], index: 4, kind: input, shape index: {}]   ;;  %s1289_s5 = inlined_call_operand.hbm [shape: f32[2,8,128], index: 5, kind: output, shape index: {0}]   ;;  %s1290_s6 = inlined_call_operand.hbm [shape: f32[2,8,512], index: 6, kind: output, shape index: {1}]  }
   0x1   :  { %1296 = sst [smem:[#allocation16_spill]] %s1287_s3 }
   0x2   :  { %12 = vsyncpa [#allocation4], 0 }
   0x3   :  { %14 = vsyncpa [#allocation4 + $0x1], 0 }
   0x4   :  { %15 = vsyncpa [#allocation7], 0 }
   0x5   :  { %17 = vsyncpa [#allocation7 + $0x1], 0 }
   0x6   :  { %18 = vsyncpa [#allocation5], 0 }
   0x7   :  { %20 = vsyncpa [#allocation5 + $0x1], 0 }
   0x8   :  { %21 = vsyncpa [#allocation10], 0 }
   0x9   :  { %23 = vsyncpa [#allocation10 + $0x1], 0  ;;  %s985_s21 = smov 0   ;;  %s987_s22 = smov 0  }
   0xa   :  { %s989_s23 = smov 0   ;;  %s991_s24 = smov 0  }
   0xb   :  { %s993_s25 = smov 0   ;;  %s995_s26 = smov 0  }
   0xc LB: > { %s645_s27 = sadd.s32 4294967295, %s941_s26   ;;  %s646_s28 = sadd.s32 4294967294, %s941_s26   ;;  %s941_s26 = sphi %s995_s26, %s29_s26   ;;  %s937_s25 = sphi %s993_s25, %s1317_s25   ;;  %s933_s24 = sphi %s991_s24, %s1316_s24   ;;  %s929_s23 = sphi %s989_s23, %s1315_s23   ;;  %s925_s22 = sphi %s987_s22, %s1314_s22   ;;  %s921_s21 = sphi %s985_s21, %s1313_s21  }
   0xd   : > { %s41_s29 = sadd.s32 1, %s937_s25  ;;  %s113_s30 = sadd.s32 1, %s929_s23 }
   0xe   : > { %p43_p0 = scmp.ge.s32.totalorder %s41_s29, 2  ;;  %p120_p1 = scmp.ne.s32.totalorder %s929_s23, %s925_s22 }
   0xf   : > { %p121_p2 = scmp.eq.s32.totalorder %s941_s26, 0  ;;  %p126_p3 = scmp.ne.s32.totalorder %s925_s22, %s921_s21 }
  0x10   : > { %s1319_s29 = smov (%p43_p0, %s41_s29), 0  ;;  %p127_p5 = scmp.eq.s32.totalorder %s645_s27, 0 }
  0x11   : > { %1297 = sst [smem:[#allocation15_spill]] %s1319_s29  ;;  %p1026_p4 = por %p121_p2, %p120_p1 }
  0x12   : > { %s110_s8 = ssub.s32 %s937_s25, %s1319_s29  ;;  %p178_p6 = scmp.eq.s32.totalorder %s645_s27, 1 }
  0x13   : > { %p111_p7 = scmp.eq.s32.totalorder %s110_s8, 0  ;;  %p1032_p8 = por %p127_p5, %p126_p3 }
  0x14   : > { %p1036_p9 = por %p178_p6, %p120_p1  ;;  %p184_p10 = scmp.eq.s32.totalorder %s646_s28, 1 }
  0x15   : > { %s1299_s9 = scalar_select %p1032_p8, 1, 0 }
  0x16   : > { %s1300_s10 = scalar_select %p1036_p9, 1, 0 }
  0x17   : > { %s1041_s11 = scalar_select %p111_p7, %s929_s23, %s113_s30  }
  0x18   : > { %p1043_p11 = por %p184_p10, %p126_p3  ;;  %p703_p13 = scmp.lt.s32.totalorder %s941_s26, 2 }
  0x19   : > { %s1050_s13 = sand.u32 1, %s929_s23   ;;  %s671_s15 = sshll.u32 %s937_s25, 10 }
  0x1a   : > { %s1301_s12 = scalar_select %p1043_p11, 1, 0 }
  0x1b   : > { %s1291_s14 = sshll.u32 %s1050_s13, 6  ;;  %s1302_s3 = sld [smem:[#allocation16_spill]] }
  0x1c   : > { %s243_s19 = scalar_lea.vmem [#allocation3], %s1291_s14  ;;  %p1067_p0 = pnand %p703_p13, %p1026_p4 }
  0x1d   : > { %s252_s20 = sshll.u32 %s243_s19, 4  ;;  %s240_s28 = scalar_lea.sflag [#allocation4], %s1050_s13  ;;  %s1063_s20 = int_to_ptr.vmem [resolvable:$true] %s252_s20 }
  0x1e   : > { %p765_p3 = pneg %p1067_p0 }
  0x21   : > { %s1059_s18 = scalar_lea.hbm %s1302_s3, %s671_s15  ;;  %s768_s7 = scalar_lea.hbm %s1302_s3, 2048 }
  0x22   : > { %s763_s30 = scalar_lea.hbm %s1059_s18, 1024  ;;  %p769_p4 = scmp.lt.u32.totalorder %s1059_s18, %s1302_s3 }
  0x23   : > { %p764_p2 = scmp.ne.s32.totalorder %s1059_s18, %s763_s30  ;;  %p770_p7 = scmp.lt.u32.totalorder %s768_s7, %s763_s30 }
  0x24   : > { %p772_p13 = scmp.lt.u32.totalorder %s763_s30, %s1059_s18 }
  0x25   : > { %p766_p5 = pnand %p765_p3, %p764_p2  ;;  %p771_p10 = por %p770_p7, %p769_p4 }
  0x27   : > { %p767_p6 = pneg %p766_p5  ;;  %p773_p12 = por %p772_p13, %p771_p10 }
  0x29   : > { %p774_p1 = pnand %p773_p12, %p767_p6 }
  0x2b   : > { %777 = shalt.err (!%p774_p1)
}
  0x2c   : > { %s778_s14 = scalar_lea.vmem %s1063_s20, 1024  ;;  %s943_s8 = smov [#allocation3]  }
  0x2d   : > { %p779_p2 = scmp.ne.s32.totalorder %s1063_s20, %s778_s14  ;;  %s783_s16 = sshll.u32 %s943_s8, 4  ;;  %s784_s16 = int_to_ptr.vmem [resolvable:$false] %s783_s16 }
  0x2e   : > { %s785_s17 = scalar_lea.vmem %s784_s16, 2048  ;;  %p786_p9 = scmp.lt.s32.totalorder %s1063_s20, %s784_s16 }
  0x2f   : > { %p781_p5 = pnand %p779_p2, %p765_p3  ;;  %p787_p4 = scmp.lt.s32.totalorder %s785_s17, %s778_s14 }
  0x31   : > { %p782_p11 = pneg %p781_p5  ;;  %p788_p7 = por %p787_p4, %p786_p9 }
  0x33   : > { %p789_p10 = pnand %p788_p7, %p782_p11 }
  0x35   : > { %792 = shalt.err (!%p789_p10)
}
  0x36   : > { %s1294_s30 = smov 512   ;;  %s945_s7 = smov 32  }
  0x37   : > { %692 = dma.hbm_to_vmem [thread:$0]  (!%p1067_p0), %s1059_s18, 1024, %s1063_s20, %s240_s28, %s1294_s30, %s1294_s30, %s945_s7  }
  0x38   : > { %p283_p9 = scmp.lt.s32.totalorder %s941_s26, 3  ;;  %s1109_s8 = scalar_lea.hbm %s1288_s4, %s671_s15 }
  0x39   : > { %p1304_p11 = scmp.ge.s32.totalorder %s941_s26, 1  ;;  %s1306_s17 = sshll.u32 %s1050_s13, 6 }
  0x3a   : > { %s266_s3 = scalar_lea.vmem [#allocation6], %s1306_s17  ;;  %s263_s18 = scalar_lea.sflag [#allocation7], %s1050_s13 }
  0x3b   : > { %p1113_p12 = pnand %p1304_p11, %p283_p9  ;;  %s275_s29 = sshll.u32 %s266_s3, 4  ;;  %s1119_s29 = int_to_ptr.vmem [resolvable:$true] %s275_s29 }
  0x3c   : > { %s793_s20 = scalar_lea.hbm %s1109_s8, 1024  ;;  %s798_s14 = scalar_lea.hbm %s1288_s4, 2048 }
  0x3d   : > { %p794_p1 = scmp.ne.s32.totalorder %s1109_s8, %s793_s20  ;;  %p799_p2 = scmp.lt.u32.totalorder %s1109_s8, %s1288_s4 }
  0x3e   : > { %p800_p5 = scmp.lt.u32.totalorder %s798_s14, %s793_s20  ;;  %p802_p7 = scmp.lt.u32.totalorder %s793_s20, %s1109_s8 }
  0x3f   : > { %p796_p6 = pnand %p794_p1, %p765_p3 }
  0x40   : > { %p801_p4 = por %p800_p5, %p799_p2 }
  0x41   : > { %p797_p13 = pneg %p796_p6 }
  0x42   : > { %p803_p10 = por %p802_p7, %p801_p4 }
  0x44   : > { %p804_p9 = pnand %p803_p10, %p797_p13 }
  0x46   : > { %807 = shalt.err (!%p804_p9)
}
  0x47   : > { %s808_s3 = scalar_lea.vmem %s1119_s29, 1024  ;;  %s946_s17 = smov [#allocation6]  }
  0x48   : > { %p809_p11 = scmp.ne.s32.totalorder %s1119_s29, %s808_s3  ;;  %s813_s15 = sshll.u32 %s946_s17, 4  ;;  %s814_s15 = int_to_ptr.vmem [resolvable:$false] %s813_s15 }
  0x49   : > { %s815_s30 = scalar_lea.vmem %s814_s15, 2048  ;;  %p816_p8 = scmp.lt.s32.totalorder %s1119_s29, %s814_s15 }
  0x4a   : > { %p811_p1 = pnand %p809_p11, %p765_p3  ;;  %p817_p2 = scmp.lt.s32.totalorder %s815_s30, %s808_s3 }
  0x4c   : > { %p812_p6 = pneg %p811_p1  ;;  %p818_p5 = por %p817_p2, %p816_p8 }
  0x4e   : > { %p819_p4 = pnand %p818_p5, %p812_p6 }
  0x50   : > { %822 = shalt.err (!%p819_p4)
}
  0x51   : > { %s1307_s20 = smov 512   ;;  %287 = sbr.rel (%p1113_p12) target bundleno = 711 (0x2c7), region = 40 }
  0x52   : > { %695 = dma.hbm_to_vmem [thread:$0]  (!%p1067_p0), %s1109_s8, 1024, %s1119_s29, %s263_s18, %s1307_s20, %s1307_s20, %s945_s7  }
  0x53   : > { %s1153_s28 = sand.u32 (!%p1113_p12), 1, %s925_s22   ;;  %p1308_p8 = scmp.ne.s32.totalorder (!%p1113_p12), %s1299_s9, 0 }
  0x54   : > { %s658_s14 = sshll.u32 (!%p1113_p12), %s1153_s28, 6  ;;  %s290_s19 = scalar_lea.sflag (!%p1113_p12), [#allocation4], %s1153_s28 }
  0x55   : > { %s1157_s27 = scalar_lea.vmem (!%p1113_p12), [#allocation3], %s658_s14 }
  0x58   : > { %904 = dma.done.wait (%p1308_p8), %s290_s19, 1024  }
  0x59   : > { %906 = vsyncadd (%p1308_p8), %s290_s19, 4294966272  ;;  %s299_s29 = scalar_lea.sflag [#allocation7], %s1153_s28  ;;  %s1164_s13 = scalar_lea.vmem [#allocation6], %s658_s14 }
  0x5a   : > { %908 = dma.done.wait (%p1308_p8), %s299_s29, 1024  }
  0x5b   : > { %910 = vsyncadd (%p1308_p8), %s299_s29, 4294966272  ;;  %v947_v0 = vmov 0   ;;  %vm413_vm0 = vcmask 31744   ;;  %v404_v1 = vld [vmem:[%s1284_s0] sm:$0xff]  ;;  %v407_v7 = vlaneseq  ;;  %vm442_vm2 = vcmask 7168   ;;  %v353_v27 = vld [vmem:[%s1157_s27] sm:$0xff] }
  0x5c   : > { %756 = vset.pattern.permute.xlu0 %v947_v0  ;;  %v414_v2 = vsel %vm413_vm0, %v404_v1, -inf  ;;  %v405_v3 = vld [vmem:[%s1285_s1] sm:$0xff]  ;;  %v354_v28 = vld [vmem:[%s1157_s27 + $0x8] sm:$0xff]  ;;  %v355_v29 = vld [vmem:[%s1157_s27 + $0x10] sm:$0xff]  ;;  %s661_s17 = sshll.u32 %s1153_s28, 5  ;;  %s674_s15 = sshll.u32 %s933_s24, 9 }
  0x5d   : > { %415 = vmax.xlane.f32.xlu0 %v414_v2  ;;  %v408_v8 = vand.u32 127, %v407_v7  ;;  %v662_v13 = vld [vmem:[%s1286_s2] ss:$0 sm:$0xff]  ;;  %v357_v31 = vld [vmem:[%s1157_s27 + $0x20] sm:$0xff]  ;;  %v358_v32 = vld [vmem:[%s1157_s27 + $0x28] sm:$0xff]  ;;  %s340_s30 = scalar_lea.vmem [#allocation9], %s661_s17 }
  0x5e   : > { %v356_v30 = vld [vmem:[%s1157_s27 + $0x18] sm:$0xff]  ;;  %v359_v33 = vld [vmem:[%s1157_s27 + $0x30] sm:$0xff]  ;;  %v361_v35 = vld [vmem:[%s1164_s13] sm:$0xff]  ;;  %s510_s20 = sshll.u32 %s340_s30, 4  ;;  %s483_s29 = scalar_lea.sflag [#allocation10], %s1153_s28  ;;  %s1206_s20 = int_to_ptr.vmem [resolvable:$true] %s510_s20 }
  0x5f   : > { %v360_v34 = vld [vmem:[%s1157_s27 + $0x38] sm:$0xff]  ;;  %v362_v37 = vld [vmem:[%s1164_s13 + $0x8] sm:$0xff]  ;;  %v363_v38 = vld [vmem:[%s1164_s13 + $0x10] sm:$0xff]  ;;  %v369_v40 = vsub.f32 %v353_v27, %v361_v35  ;;  %s1204_s27 = scalar_lea.hbm %s1290_s6, %s674_s15  ;;  %p1309_p3 = scmp.ne.s32.totalorder %s1300_s10, 0 }
  0x60   : > { %v364_v39 = vld [vmem:[%s1164_s13 + $0x18] sm:$0xff]  ;;  %v365_v42 = vld [vmem:[%s1164_s13 + $0x20] sm:$0xff]  ;;  %v366_v43 = vld [vmem:[%s1164_s13 + $0x28] sm:$0xff]  ;;  %v370_v45 = vsub.f32 %v354_v28, %v362_v37  ;;  %v371_v46 = vsub.f32 %v355_v29, %v363_v38  ;;  %s948_s7 = smov [#allocation9]  }
  0x61   : > { %v367_v44 = vld [vmem:[%s1164_s13 + $0x30] sm:$0xff]  ;;  %v372_v47 = vsub.f32 %v356_v30, %v364_v39  ;;  %v368_v48 = vld [vmem:[%s1164_s13 + $0x38] sm:$0xff]  ;;  %v373_v49 = vsub.f32 %v357_v31, %v365_v42  ;;  %v374_v50 = vsub.f32 %v358_v32, %v366_v43  ;;  %v381_v52 = vmul.f32 %v369_v40, %v369_v40  ;;  %s823_s13 = scalar_lea.vmem %s1206_s20, 512  ;;  %s827_s8 = sshll.u32 %s948_s7, 4  ;;  %s828_s8 = int_to_ptr.vmem [resolvable:$false] %s827_s8 }
  0x62   : > { %v375_v51 = vsub.f32 %v359_v33, %v367_v44  ;;  %v376_v54 = vsub.f32 %v360_v34, %v368_v48  ;;  %v382_v55 = vmul.f32 %v370_v45, %v370_v45  ;;  %v383_v56 = vmul.f32 %v371_v46, %v371_v46  ;;  %p824_p0 = scmp.ne.s32.totalorder %s1206_s20, %s823_s13  ;;  %s829_s16 = scalar_lea.vmem %s828_s8, 1024 }
  0x63   : > { %v384_v58 = vmul.f32 %v372_v47, %v372_v47  ;;  %v385_v59 = vmul.f32 %v373_v49, %v373_v49  ;;  %v386_v60 = vmul.f32 %v374_v50, %v374_v50  ;;  %p830_p7 = scmp.lt.s32.totalorder %s1206_s20, %s828_s8  ;;  %p831_p10 = scmp.lt.s32.totalorder %s829_s16, %s823_s13 }
  0x64   : > { %v387_v61 = vmul.f32 %v375_v51, %v375_v51  ;;  %v388_v0 = vmul.f32 %v376_v54, %v376_v54  ;;  %p825_p12 = pnand %p824_p0, %p1309_p3 }
  0x65   : > { %v390_v2 = vadd.f32 %v386_v60, %v382_v55  ;;  %p832_p9 = por %p831_p10, %p830_p7 }
  0x66   : > { %p826_p13 = pneg %p825_p12 }
  0x67   : > { %474 = vst [vmem:[%s340_s30 + $0x8] sm:$0xff] %v390_v2 }
  0x68   : > { %p833_p11 = pnand %p832_p9, %p826_p13 }
  0x73   : > { %410 = vperm.xlu0 %756, %v405_v3   ;;  %v391_v3 = vadd.f32 %v387_v61, %v383_v56 }
  0x75   : > { %475 = vst [vmem:[%s340_s30 + $0x10] sm:$0xff] %v391_v3 }
  0xea   : > { %v416_v4 = vpop.xlane.xlu0 %415 }
  0xeb   : > { %v417_v5 = vsub.f32 %v404_v1, %v416_v4 }
  0xed   : > { %v418_v6 = vmul.f32 1.442695, %v417_v5 }
  0xef   : > { %757 = vpow2.f32 %v418_v6  ;;  %v392_v6 = vadd.f32 %v388_v0, %v384_v58 }
  0xf1   : > { %476 = vst [vmem:[%s340_s30 + $0x18] sm:$0xff] %v392_v6 }
  0xf2   : > { %v411_v9 = vpop.permute.xlu0 %410 }
  0xf3   : > { %vm412_vm1 = vcmp.eq.s32.totalorder %v408_v8, %v411_v9 }
  0xf4   : > { %v426_v11 = vsel %vm412_vm1, %v404_v1, 0.0  ;;  %v436_v15 = vsel %vm412_vm1, %v662_v13, 0.0  ;;  %v389_v1 = vadd.f32 %v385_v59, %v381_v52 }
  0xf5   : > { %v427_v14 = vsel %vm413_vm0, %v426_v11, 0.0  ;;  %v437_v16 = vsel %vm413_vm0, %v436_v15, 0.0 }
  0xf6   : > { %473 = vst [vmem:[%s340_s30] sm:$0xff] %v389_v1 }
  0xf9   : > { %v758_v10 = vpop.eup %757 }
  0xfa   : > { %v420_v12 = vsel %vm413_vm0, %v758_v10, 0.0 }
  0xfb   : > { %421 = vadd.xlane.f32.xlu1 %v420_v12 }
  0xff   : > { %428 = vadd.xlane.f32.xlu1 %v427_v14 }
 0x103   : > { %438 = vadd.xlane.f32.xlu1 %v437_v16 }
 0x188   : > { %v422_v17 = vpop.xlane.xlu1 %421 }
 0x189   : > { %759 = vlog2.f32 %v422_v17 }
 0x18c   : > { %v429_v19 = vpop.xlane.xlu1 %428 }
 0x190   : > { %v439_v23 = vpop.xlane.xlu1 %438 }
 0x191   : > { %v453_v26 = vsel %vm442_vm2, %v439_v23, 0.0 }
 0x193   : > { %v760_v18 = vpop.eup %759 }
 0x194   : > { %v424_v20 = vmul.f32 0.6931472, %v760_v18 }
 0x196   : > { %v425_v21 = vadd.f32 %v424_v20, %v416_v4 }
 0x198   : > { %v440_v22 = vsub.f32 %v425_v21, %v429_v19 }
 0x19a   : > { %v441_v24 = vmul.f32 %v440_v22, %v439_v23 }
 0x19c   : > { %v443_v25 = vsel %vm442_vm2, %v441_v24, 0.0 }
 0x19d   : > { %444 = vadd.xlane.f32.xlu1 %v443_v25 }
 0x1a1   : > { %454 = vadd.xlane.f32.xlu1 %v453_v26 }
 0x22a   : > { %v445_v36 = vpop.xlane.xlu1 %444 }
 0x22b   : > { %v446_v41 = vrot.slane %v445_v36, 4 }
 0x22d   : > { %v447_v53 = vadd.f32 %v446_v41, %v445_v36 }
 0x22e   : > { %v455_v57 = vpop.xlane.xlu1 %454 }
 0x22f   : > { %v448_v62 = vrot.slane %v447_v53, 2  ;;  %v456_v63 = vrot.slane %v455_v57, 4 }
 0x231   : > { %v457_v4 = vadd.f32 %v456_v63, %v455_v57  ;;  %v449_v5 = vadd.f32 %v448_v62, %v447_v53 }
 0x233   : > { %v458_v7 = vrot.slane %v457_v4, 2  ;;  %v450_v8 = vrot.slane %v449_v5, 1 }
 0x234   : > { %836 = shalt.err (!%p833_p11)
}
 0x235   : > { %s837_s18 = scalar_lea.hbm %s1204_s27, 512  ;;  %s841_s17 = scalar_lea.hbm %s1290_s6, 1024 }
 0x236   : > { %p838_p1 = scmp.ne.s32.totalorder %s1204_s27, %s837_s18  ;;  %p842_p5 = scmp.lt.u32.totalorder %s1204_s27, %s1290_s6 }
 0x237   : > { %p843_p4 = scmp.lt.u32.totalorder %s841_s17, %s837_s18  ;;  %p845_p0 = scmp.lt.u32.totalorder %s837_s18, %s1204_s27 }
 0x238   : > { %p839_p6 = pnand %p838_p1, %p1309_p3 }
 0x239   : > { %p844_p8 = por %p843_p4, %p842_p5 }
 0x23a   : > { %p840_p2 = pneg %p839_p6 }
 0x23b   : > { %p846_p12 = por %p845_p0, %p844_p8 }
 0x23d   : > { %p847_p13 = pnand %p846_p12, %p840_p2 }
 0x23f   : > { %850 = shalt.err (!%p847_p13)
}
 0x240   : > { %686 = dma.vmem_to_hbm [thread:$0]  (%p1309_p3), %s1206_s20, 512, %s1204_s27, %s483_s29   ;;  %v459_v9 = vadd.f32 %v458_v7, %v457_v4  ;;  %v451_v10 = vadd.f32 %v450_v8, %v449_v5 }
 0x241   : > { %s660_s13 = sshll.u32 %s1153_s28, 3  ;;  %s665_s7 = sshll.u32 %s933_s24, 7 }
 0x242   : > { %675 = vpush %v451_v10  ;;  %v460_v11 = vrot.slane %v459_v9, 1  ;;  %s333_s8 = scalar_lea.vmem [#allocation8], %s660_s13  ;;  %s1235_s9 = scalar_lea.hbm %s1289_s5, %s665_s7 }
 0x243   : > { %s496_s16 = sshll.u32 %s333_s8, 4  ;;  %s478_s3 = scalar_lea.sflag [#allocation5], %s1153_s28  ;;  %s1237_s16 = int_to_ptr.vmem [resolvable:$true] %s496_s16 }
 0x244   : > { %v461_v12 = vadd.f32 %v460_v11, %v459_v9  ;;  %s851_s17 = scalar_lea.vmem %s1237_s16, 128  ;;  %s949_s24 = smov [#allocation8]  }
 0x245   : > { %p852_p7 = scmp.ne.s32.totalorder %s1237_s16, %s851_s17  ;;  %s855_s15 = sshll.u32 %s949_s24, 4  ;;  %s856_s15 = int_to_ptr.vmem [resolvable:$false] %s855_s15 }
 0x246   : > { %677 = vpush %v461_v12  ;;  %s857_s30 = scalar_lea.vmem %s856_s15, 256  ;;  %p858_p11 = scmp.lt.s32.totalorder %s1237_s16, %s856_s15 }
 0x247   : > { %p853_p10 = pnand %p852_p7, %p1309_p3  ;;  %p859_p1 = scmp.lt.s32.totalorder %s857_s30, %s851_s17 }
 0x249   : > { %p854_p9 = pneg %p853_p10  ;;  %p860_p6 = por %p859_p1, %p858_p11 }
 0x24b   : > { %p861_p2 = pnand %p860_p6, %p854_p9 }
 0x273   : > { %s676_s14 = spop %675 }
 0x277   : > { %s678_s19 = spop %677 }
 0x278   : > { %v463_v13 = vstv %s678_s19 }
 0x279   : > { %761 = vrcp.f32 %v463_v13 }
 0x283   : > { %v762_v14 = vpop.eup %761 }
 0x284   : > { %679 = vpush %v762_v14 }
 0x2b5   : > { %s680_s18 = spop %679 }
 0x2b6   : > { %s466_s20 = smul.f32 %s680_s18, %s676_s14 }
 0x2b8   : > { %v467_v15 = vstv %s466_s20 }
 0x2b9   : > { %468 = vst [vmem:[%s333_s8] sm:$0xff] %v467_v15 }
 0x2ba   : > { %864 = shalt.err (!%p861_p2)
}
 0x2bb   : > { %s865_s28 = scalar_lea.hbm %s1235_s9, 128  ;;  %s869_s13 = scalar_lea.hbm %s1289_s5, 256 }
 0x2bc   : > { %p866_p5 = scmp.ne.s32.totalorder %s1235_s9, %s865_s28  ;;  %p870_p0 = scmp.lt.u32.totalorder %s1235_s9, %s1289_s5 }
 0x2bd   : > { %p871_p12 = scmp.lt.u32.totalorder %s869_s13, %s865_s28  ;;  %p873_p7 = scmp.lt.u32.totalorder %s865_s28, %s1235_s9 }
 0x2be   : > { %p867_p4 = pnand %p866_p5, %p1309_p3 }
 0x2bf   : > { %p872_p13 = por %p871_p12, %p870_p0 }
 0x2c0   : > { %p868_p8 = pneg %p867_p4 }
 0x2c1   : > { %p874_p10 = por %p873_p7, %p872_p13 }
 0x2c3   : > { %p875_p9 = pnand %p874_p10, %p868_p8 }
 0x2c5   : > { %878 = shalt.err (!%p875_p9)
}
 0x2c6   : > { %685 = dma.vmem_to_hbm [thread:$0]  (%p1309_p3), %s1237_s16, 128, %s1235_s9, %s478_s3  }
 0x2c7 PF: > { %s522_s18 = sand.u32 1, %s921_s21   ;;  %p1310_p11 = scmp.ne.s32.totalorder %s1301_s12, 0 }
 0x2c8   : > { %p1311_p1 = scmp.ge.s32.totalorder %s941_s26, 2  ;;  %s523_s20 = scalar_lea.sflag [#allocation5], %s522_s18 }
 0x2ca   : > { %p697_p6 = pnand %p1311_p1, %p1310_p11 }
 0x2cc   : > { %912 = dma.done.wait (!%p697_p6), %s523_s20, 128  }
 0x2cd   : > { %914 = vsyncadd (!%p697_p6), %s523_s20, 4294967168  ;;  %s532_s27 = scalar_lea.sflag [#allocation10], %s522_s18 }
 0x2ce   : > { %916 = dma.done.wait (!%p697_p6), %s532_s27, 512  }
 0x2cf   : > { %918 = vsyncadd (!%p697_p6), %s532_s27, 4294966784  ;;  %s29_s26 = sadd.s32 1, %s941_s26   ;;  %s1312_s10 = sld [smem:[#allocation15_spill]] }
 0x2d0   : > { %p26_p2 = scmp.ge.s32.totalorder %s29_s26, 4   ;;  %s1313_s21 = smov %s925_s22 }
 0x2d1   : > { %s1314_s22 = smov %s929_s23  ;;  %s1315_s23 = smov %s1041_s11 }
 0x2d2   : > { %s1316_s24 = smov %s937_s25  ;;  %28 = sbr.rel (!%p26_p2) target bundleno = 12 (0xc), region = 123 }
 0x2d5   : > { %s1317_s25 = smov %s1312_s10 }
 0x2d9   :  { %537 = vsyncpa [#allocation4], 1 }
 0x2da   :  { %539 = vsyncpa [#allocation4 + $0x1], 1 }
 0x2db   :  { %540 = vsyncpa [#allocation7], 1 }
 0x2dc   :  { %542 = vsyncpa [#allocation7 + $0x1], 1 }
 0x2dd   :  { %543 = vsyncpa [#allocation5], 1 }
 0x2de   :  { %545 = vsyncpa [#allocation5 + $0x1], 1 }
 0x2df   :  { %546 = vsyncpa [#allocation10], 1 }
 0x2e0   :  { %548 = vsyncpa [#allocation10 + $0x1], 1 }

</bundles_post_ra>
